<compile_context>
chip_gen: v6e
topology: v6e:2x2x1
jax: 0.10.0
libtpu: 0.0.40
codegen_flags: <defaults>
</compile_context>

<pallas_src>
import functools

import jax
import jax.numpy as jnp
from jax.experimental import pallas as pl
from jax.experimental.pallas import tpu as pltpu


def _round_up(x, m):
    return (x + m - 1) // m * m


def _sublane_multiple(dtype):
    # f32 -> 8 sublanes per group, bf16 -> 16 (packed), int8 -> 32.
    return 8 * max(1, 4 // jnp.dtype(dtype).itemsize)


def _conv_relu_kernel(xf_ref, w_ref, out_ref, patches_ref, *, shifts, cin, m_out):
    # xf_ref:      (Cin, Sp)      one sample, spatially zero-padded + flattened
    # w_ref:       (Cout, K)      K = KH*KW*Cin, (kh, kw, cin)-ordered
    # out_ref:     (Cout, M_out)  M_out = Hout*Wp (junk right-edge cols included)
    # patches_ref: (K, M_out)     VMEM scratch: in-kernel im2col
    for t, s in enumerate(shifts):                       # KH*KW static taps, unrolled
        patches_ref[t * cin:(t + 1) * cin, :] = xf_ref[:, s:s + m_out]
    acc = jnp.dot(w_ref[...], patches_ref[...],
                  preferred_element_type=jnp.float32)    # single MXU matmul
    out_ref[...] = jnp.maximum(acc, 0.0).astype(out_ref.dtype)


@functools.partial(jax.jit, static_argnames=("stride", "pad", "compute_dtype"))
def conv_relu(x_nchw, weight, *, stride=1, pad=1, compute_dtype=None):
    """Conv2d(kernel_size=KHxKW, stride=1, padding=pad, bias=False) + ReLU.

    x_nchw : (N, Cin, H, W)      float32
    weight : (Cout, Cin, KH, KW) float32  (PyTorch layout)
    returns: (N, Cout, Hout, Wout) float32
    """
    N, Cin, H, W = x_nchw.shape
    Cout, Cin_w, KH, KW = weight.shape
    assert Cin == Cin_w
    # TODO(synk): stride > 1 needs strided lane slices (pl.ds(..., stride=s)); the
    # module's default stride=1 is what is implemented here.
    assert stride == 1, "conv_relu Pallas kernel implements stride=1 only"

    Hp, Wp = H + 2 * pad, W + 2 * pad
    Hout, Wout = Hp - KH + 1, Wp - KW + 1
    K = KH * KW * Cin
    M_out = Hout * Wp                               # contiguous positions incl. junk cols
    Sp = _round_up(Hp * Wp + KW - 1, 128)           # flattened width, lane-rounded
    cdt = jnp.dtype(compute_dtype) if compute_dtype is not None else x_nchw.dtype

    # ---- wrapper-side layout plumbing (≈1x input bytes; no 9x im2col in HBM) ----
    x_pad = jnp.pad(x_nchw.astype(cdt), ((0, 0), (0, 0), (pad, pad), (pad, pad)))
    xf = x_pad.reshape(N, Cin, Hp * Wp)
    xf = jnp.pad(xf, ((0, 0), (0, 0), (0, Sp - Hp * Wp)))

    # (Cout, Cin, KH, KW) -> (Cout, KH, KW, Cin) -> (Cout, K): matches tap order below.
    wmat = jnp.transpose(weight, (0, 2, 3, 1)).reshape(Cout, K).astype(cdt)

    # Tap (kh, kw) of output position p = h*Wp + w lives at flattened index p + shift.
    shifts = tuple(kh * Wp + kw for kh in range(KH) for kw in range(KW))

    # ---- VMEM budget from layout-padded tiles (sublane x lane rounding) ----------
    itemsize = jnp.dtype(cdt).itemsize
    sub = _sublane_multiple(cdt)
    in_tile = _round_up(Cin, sub) * _round_up(Sp, 128) * itemsize
    w_tile = _round_up(Cout, sub) * _round_up(K, 128) * itemsize
    out_tile = _round_up(Cout, 8) * _round_up(M_out, 128) * 4          # f32 output
    patches_tile = _round_up(K, sub) * _round_up(M_out, 128) * itemsize
    vmem_bytes = 2 * (in_tile + w_tile + out_tile) + patches_tile + (4 << 20)
    vmem_bytes = min(vmem_bytes, 32 << 20)   # safe on v5e/v6e (128 MiB) and v7x (64 MiB)

    kernel = functools.partial(_conv_relu_kernel, shifts=shifts, cin=Cin, m_out=M_out)

    out_full = pl.pallas_call(
        kernel,
        out_shape=jax.ShapeDtypeStruct((N, Cout, M_out), x_nchw.dtype),
        grid_spec=pltpu.PrefetchScalarGridSpec(
            num_scalar_prefetch=0,
            grid=(N,),                                              # one sample / step
            in_specs=[
                pl.BlockSpec((None, Cin, Sp), lambda n: (n, 0, 0)),  # streamed sample
                pl.BlockSpec((Cout, K), lambda n: (0, 0)),           # resident weights
            ],
            out_specs=pl.BlockSpec((None, Cout, M_out), lambda n: (n, 0, 0)),
            scratch_shapes=[pltpu.VMEM((K, M_out), cdt)],            # im2col scratch
        ),
        compiler_params=pltpu.CompilerParams(
            dimension_semantics=("parallel",),
            vmem_limit_bytes=vmem_bytes,
        ),
    )(xf, wmat)

    # Drop the junk right-edge columns; result is already in NCHW layout.
    return out_full.reshape(N, Cout, Hout, Wp)[:, :, :, :Wout]


if __name__ == "__main__":
    key = jax.random.PRNGKey(0)
    kx, kw = jax.random.split(key)

    N, Cin, Cout, H, W = 2, 4, 8, 16, 16
    x = jax.random.normal(kx, (N, Cin, H, W), dtype=jnp.float32)
    # Deterministic init mimicking nn.Conv2d default (uniform in +/- 1/sqrt(fan_in)).
    fan_in = Cin * 3 * 3
    bound = 1.0 / (fan_in ** 0.5)
    weight = jax.random.uniform(kw, (Cout, Cin, 3, 3), jnp.float32, -bound, bound)

    # Reference: XLA conv + relu (NCHW, OIHW).
    ref = jax.lax.conv_general_dilated(
        x, weight, window_strides=(1, 1), padding=((1, 1), (1, 1)),
        dimension_numbers=("NCHW", "OIHW", "NCHW"))
    ref = jnp.maximum(ref, 0.0)

    # f32 path (matches the PyTorch module semantics).
    out = jax.block_until_ready(conv_relu(x, weight))
    assert out.shape == (N, Cout, H, W)
    assert jnp.allclose(out, ref, atol=1e-5, rtol=1e-5)

    # bf16 streaming-operand / f32-accumulation path (MXU/HBM-friendly on v6e/v7x).
    out_bf16 = jax.block_until_ready(conv_relu(x, weight, compute_dtype=jnp.bfloat16))
    assert out_bf16.dtype == jnp.float32
    assert jnp.allclose(out_bf16, ref, atol=5e-2, rtol=5e-2)

    print("KERNEL_OK")
</pallas_src>

<mosaic_0001>
module attributes {stable_mosaic.version = 11 : i64} {
  func.func @_conv_relu_kernel(%arg0: i32, %arg1: memref<1x4x384xf32, #tpu.memory_space<vmem>>, %arg2: memref<8x36xf32, #tpu.memory_space<vmem>>, %arg3: memref<1x8x288xf32, #tpu.memory_space<vmem>>, %arg4: memref<36x288xf32, #tpu.memory_space<vmem>>) attributes {dimension_semantics = [#tpu.dimension_semantics<parallel>], iteration_bounds = array<i64: 2>, scalar_prefetch = 0 : i64, scratch_operands = 1 : i64, tpu.core_type = #tpu.core_type<tc>, window_params = [{transform_indices = @transform_0, window_bounds = array<i64: 1, 4, 384>}, {pipeline_mode = #tpu.pipeline_mode<synchronous>, transform_indices = @transform_1, window_bounds = array<i64: 8, 36>}, {transform_indices = @transform_2, window_bounds = array<i64: 1, 8, 288>}]} {
    %c0 = arith.constant 0 : index
    %c0_0 = arith.constant 0 : index
    %c0_1 = arith.constant 0 : index
    %0 = vector.load %arg1[%c0, %c0_0, %c0_1] : memref<1x4x384xf32, #tpu.memory_space<vmem>>, vector<1x4x288xf32>
    %1 = vector.shape_cast %0 : vector<1x4x288xf32> to vector<4x288xf32>
    %c0_2 = arith.constant 0 : index
    %c0_3 = arith.constant 0 : index
    %2 = vector.load %arg4[%c0_2, %c0_3] : memref<36x288xf32, #tpu.memory_space<vmem>>, vector<4x288xf32>
    tpu.vector_store %arg4[%c0_2, %c0_3], %1 {strides = array<i32>} : memref<36x288xf32, #tpu.memory_space<vmem>>, vector<4x288xf32>,
    %c0_4 = arith.constant 0 : index
    %c0_5 = arith.constant 0 : index
    %c1 = arith.constant 1 : index
    %3 = vector.load %arg1[%c0_4, %c0_5, %c1] : memref<1x4x384xf32, #tpu.memory_space<vmem>>, vector<1x4x288xf32>
    %4 = vector.shape_cast %3 : vector<1x4x288xf32> to vector<4x288xf32>
    %c4 = arith.constant 4 : index
    %c0_6 = arith.constant 0 : index
    %5 = vector.load %arg4[%c4, %c0_6] : memref<36x288xf32, #tpu.memory_space<vmem>>, vector<4x288xf32>
    tpu.vector_store %arg4[%c4, %c0_6], %4 {strides = array<i32>} : memref<36x288xf32, #tpu.memory_space<vmem>>, vector<4x288xf32>,
    %c0_7 = arith.constant 0 : index
    %c0_8 = arith.constant 0 : index
    %c2 = arith.constant 2 : index
    %6 = vector.load %arg1[%c0_7, %c0_8, %c2] : memref<1x4x384xf32, #tpu.memory_space<vmem>>, vector<1x4x288xf32>
    %7 = vector.shape_cast %6 : vector<1x4x288xf32> to vector<4x288xf32>
    %c8 = arith.constant 8 : index
    %c0_9 = arith.constant 0 : index
    %8 = vector.load %arg4[%c8, %c0_9] : memref<36x288xf32, #tpu.memory_space<vmem>>, vector<4x288xf32>
    tpu.vector_store %arg4[%c8, %c0_9], %7 {strides = array<i32>} : memref<36x288xf32, #tpu.memory_space<vmem>>, vector<4x288xf32>,
    %c0_10 = arith.constant 0 : index
    %c0_11 = arith.constant 0 : index
    %c18 = arith.constant 18 : index
    %9 = vector.load %arg1[%c0_10, %c0_11, %c18] : memref<1x4x384xf32, #tpu.memory_space<vmem>>, vector<1x4x288xf32>
    %10 = vector.shape_cast %9 : vector<1x4x288xf32> to vector<4x288xf32>
    %c12 = arith.constant 12 : index
    %c0_12 = arith.constant 0 : index
    %11 = vector.load %arg4[%c12, %c0_12] : memref<36x288xf32, #tpu.memory_space<vmem>>, vector<4x288xf32>
    tpu.vector_store %arg4[%c12, %c0_12], %10 {strides = array<i32>} : memref<36x288xf32, #tpu.memory_space<vmem>>, vector<4x288xf32>,
    %c0_13 = arith.constant 0 : index
    %c0_14 = arith.constant 0 : index
    %c19 = arith.constant 19 : index
    %12 = vector.load %arg1[%c0_13, %c0_14, %c19] : memref<1x4x384xf32, #tpu.memory_space<vmem>>, vector<1x4x288xf32>
    %13 = vector.shape_cast %12 : vector<1x4x288xf32> to vector<4x288xf32>
    %c16 = arith.constant 16 : index
    %c0_15 = arith.constant 0 : index
    %14 = vector.load %arg4[%c16, %c0_15] : memref<36x288xf32, #tpu.memory_space<vmem>>, vector<4x288xf32>
    tpu.vector_store %arg4[%c16, %c0_15], %13 {strides = array<i32>} : memref<36x288xf32, #tpu.memory_space<vmem>>, vector<4x288xf32>,
    %c0_16 = arith.constant 0 : index
    %c0_17 = arith.constant 0 : index
    %c20 = arith.constant 20 : index
    %15 = vector.load %arg1[%c0_16, %c0_17, %c20] : memref<1x4x384xf32, #tpu.memory_space<vmem>>, vector<1x4x288xf32>
    %16 = vector.shape_cast %15 : vector<1x4x288xf32> to vector<4x288xf32>
    %c20_18 = arith.constant 20 : index
    %c0_19 = arith.constant 0 : index
    %17 = vector.load %arg4[%c20_18, %c0_19] : memref<36x288xf32, #tpu.memory_space<vmem>>, vector<4x288xf32>
    tpu.vector_store %arg4[%c20_18, %c0_19], %16 {strides = array<i32>} : memref<36x288xf32, #tpu.memory_space<vmem>>, vector<4x288xf32>,
    %c0_20 = arith.constant 0 : index
    %c0_21 = arith.constant 0 : index
    %c36 = arith.constant 36 : index
    %18 = vector.load %arg1[%c0_20, %c0_21, %c36] : memref<1x4x384xf32, #tpu.memory_space<vmem>>, vector<1x4x288xf32>
    %19 = vector.shape_cast %18 : vector<1x4x288xf32> to vector<4x288xf32>
    %c24 = arith.constant 24 : index
    %c0_22 = arith.constant 0 : index
    %20 = vector.load %arg4[%c24, %c0_22] : memref<36x288xf32, #tpu.memory_space<vmem>>, vector<4x288xf32>
    tpu.vector_store %arg4[%c24, %c0_22], %19 {strides = array<i32>} : memref<36x288xf32, #tpu.memory_space<vmem>>, vector<4x288xf32>,
    %c0_23 = arith.constant 0 : index
    %c0_24 = arith.constant 0 : index
    %c37 = arith.constant 37 : index
    %21 = vector.load %arg1[%c0_23, %c0_24, %c37] : memref<1x4x384xf32, #tpu.memory_space<vmem>>, vector<1x4x288xf32>
    %22 = vector.shape_cast %21 : vector<1x4x288xf32> to vector<4x288xf32>
    %c28 = arith.constant 28 : index
    %c0_25 = arith.constant 0 : index
    %23 = vector.load %arg4[%c28, %c0_25] : memref<36x288xf32, #tpu.memory_space<vmem>>, vector<4x288xf32>
    tpu.vector_store %arg4[%c28, %c0_25], %22 {strides = array<i32>} : memref<36x288xf32, #tpu.memory_space<vmem>>, vector<4x288xf32>,
    %c0_26 = arith.constant 0 : index
    %c0_27 = arith.constant 0 : index
    %c38 = arith.constant 38 : index
    %24 = vector.load %arg1[%c0_26, %c0_27, %c38] : memref<1x4x384xf32, #tpu.memory_space<vmem>>, vector<1x4x288xf32>
    %25 = vector.shape_cast %24 : vector<1x4x288xf32> to vector<4x288xf32>
    %c32 = arith.constant 32 : index
    %c0_28 = arith.constant 0 : index
    %26 = vector.load %arg4[%c32, %c0_28] : memref<36x288xf32, #tpu.memory_space<vmem>>, vector<4x288xf32>
    tpu.vector_store %arg4[%c32, %c0_28], %25 {strides = array<i32>} : memref<36x288xf32, #tpu.memory_space<vmem>>, vector<4x288xf32>,
    %c0_29 = arith.constant 0 : index
    %c0_30 = arith.constant 0 : index
    %27 = vector.load %arg2[%c0_29, %c0_30] : memref<8x36xf32, #tpu.memory_space<vmem>>, vector<8x36xf32>
    %c0_31 = arith.constant 0 : index
    %c0_32 = arith.constant 0 : index
    %28 = vector.load %arg4[%c0_31, %c0_32] : memref<36x288xf32, #tpu.memory_space<vmem>>, vector<36x288xf32>
    %cst = arith.constant dense<0.000000e+00> : vector<8x288xf32>
    %29 = tpu.matmul %27, %28, %cst {dimension_numbers = #tpu.dot_dimension_numbers<[1], [0], [0], [1], [0, 0, 1, 1], [], []>} : vector<8x36xf32>, vector<36x288xf32>, vector<8x288xf32> -> vector<8x288xf32>
    %cst_33 = arith.constant 0.000000e+00 : f32
    %30 = vector.broadcast %cst_33 : f32 to vector<8x288xf32>
    %31 = arith.maximumf %29, %30 : vector<8x288xf32>
    %c0_34 = arith.constant 0 : index
    %c0_35 = arith.constant 0 : index
    %c0_36 = arith.constant 0 : index
    %32 = vector.load %arg3[%c0_34, %c0_35, %c0_36] : memref<1x8x288xf32, #tpu.memory_space<vmem>>, vector<1x8x288xf32>
    %33 = vector.shape_cast %32 : vector<1x8x288xf32> to vector<8x288xf32>
    %34 = vector.shape_cast %31 : vector<8x288xf32> to vector<1x8x288xf32>
    tpu.vector_store %arg3[%c0_34, %c0_35, %c0_36], %34 {strides = array<i32>} : memref<1x8x288xf32, #tpu.memory_space<vmem>>, vector<1x8x288xf32>,
    return
  }
  func.func @transform_0(%arg0: i32) -> (i32, i32, i32) {
    %c0_i32 = arith.constant 0 : i32
    %c0_i32_0 = arith.constant 0 : i32
    %c0_i32_1 = arith.constant 0 : i32
    return %arg0, %c0_i32, %c0_i32_0 : i32, i32, i32
  }
  func.func @transform_1(%arg0: i32) -> (i32, i32) {
    %c0_i32 = arith.constant 0 : i32
    %c0_i32_0 = arith.constant 0 : i32
    %c0_i32_1 = arith.constant 0 : i32
    return %c0_i32, %c0_i32_0 : i32, i32
  }
  func.func @transform_2(%arg0: i32) -> (i32, i32, i32) {
    %c0_i32 = arith.constant 0 : i32
    %c0_i32_0 = arith.constant 0 : i32
    %c0_i32_1 = arith.constant 0 : i32
    return %arg0, %c0_i32, %c0_i32_0 : i32, i32, i32
  }
}

</mosaic_0001>

<bundles_post_ra>
// kernel: conv_relu.1
= control target key start
LH: loop header
LB: loop body
LE: loop exit
PB: predicated region body
PF: predicated region fallthrough
CT: control target
= control target key end

     0   :  { %s643_s9 = smov 0   ;;  %s704_s0 = inlined_call_operand.vmem [shape: f32[2,4,384], index: 0, kind: input, shape index: {}]   ;;  %s705_s1 = inlined_call_operand.vmem [shape: f32[8,36], index: 1, kind: input, shape index: {}]   ;;  %s706_s2 = inlined_call_operand.vmem [shape: f32[2,8,288], index: 2, kind: output, shape index: {}]  }
   0x1 LB: > { %s551_s10 = sadd.s32 4294967295, %s616_s9   ;;  %p555_p0 = scmp.ge.s32.totalorder %s616_s9, 1  ;;  %s616_s9 = sphi %s643_s9, %s12_s9  }
   0x2   : > { %p112_p1 = scmp.lt.s32.totalorder %s616_s9, 3 }
   0x4   : > { %p113_p2 = pnand %p555_p0, %p112_p1 }
   0x5   : > { %p134_p3 = scmp.lt.s32.totalorder (!%p113_p2), %s551_s10, 1  ;;  %s619_s15 = smov (!%p113_p2), 90  }
   0x6   : > { %116 = sbr.rel (%p113_p2) target bundleno = 384 (0x180), region = 28  ;;  %s620_s16 = smov (!%p113_p2), 91  }
   0x7   : > { %s621_s17 = smov (!%p113_p2), 92   ;;  %s622_s18 = smov (!%p113_p2), 109  }
   0x8   : > { %s623_s19 = smov (!%p113_p2), 108   ;;  %s624_s20 = smov (!%p113_p2), 126  }
   0x9   : > { %s625_s21 = smov (!%p113_p2), 110   ;;  %s626_s22 = smov (!%p113_p2), 127  }
   0xb   : > { %v618_v0 = vmov 0.0   ;;  %s708_s10 = smov (!%p134_p3, %s551_s10), 1  ;;  %vm151_vm0 = vcmask 257024   ;;  %vm627_vm1 = vmmov 0   ;;  %vm309_vm2 = vcmask 736256  }
   0xc   : > { %571 = vmatprep.subr.mxu1 %v618_v0  ;;  %412 = vmatprep.mubr.f32.mxu0 %v618_v0  ;;  %s584_s11 = smul.u32 12, %s708_s10  ;;  %vm268_vm3 = vcmask 752640   ;;  %vm338_vm4 = vcmask 1043456   ;;  %vm173_vm5 = vcmask 261124   ;;  %vm289_vm6 = vcmask 744448  }
   0xd   : > { %581 = vmatprep.mubr.msk.f32.mxu1 %vm627_vm1, %v618_v0  ;;  %vm227_vm7 = vcmask 891904   ;;  %vm248_vm8 = vcmask 883712   ;;  %vm186_vm9 = vcmask 1031168   ;;  %vm207_vm10 = vcmask 900096   ;;  %s585_s25 = smul.u32 24, %s708_s10 }
   0xe   : > { %s659_s14 = scalar_lea.vmem %s704_s0, %s584_s11  ;;  %vm165_vm11 = vcmask 1039360   ;;  %vm334_vm12 = vcmask 293888   ;;  %vm494_vm13 = vcmask 261120  }
   0xf   : > { %v299_v1 = vld [vmem:[%s659_s14 + $0x8] sm:$0xf]  ;;  %v298_v2 = vld [vmem:[%s659_s14] sm:$0xff]  ;;  %s143_s28 = scalar_lea.vmem %s706_s2, %s585_s25 }
  0x10   : > { %307 = vrot.lane.b32.xlu0 %v299_v1, %s619_s15  ;;  %303 = vrot.lane.b32.xlu1 %v298_v2, %s619_s15  ;;  %v302_v3 = vcombine.high %v298_v2, %v298_v2  ;;  %149 = vst [vmem:[#allocation2] sm:$0xf] %v298_v2  ;;  %v258_v4 = vld [vmem:[%s659_s14 + $0x8] sm:$0xf]  ;;  %v281_v7 = vcombine.low %v298_v2, %v298_v2 }
  0x11   : > { %v145_v5 = vld [vmem:[%s659_s14 + $0x8] sm:$0xf] }
  0x12   : > { %150 = vst [vmem:[#allocation2 + $0x8] sm:$0xf] %v302_v3  ;;  %152 = vst.msk [vmem:[#allocation2 + $0x10] sm:$0xf] %vm151_vm0, %v145_v5  ;;  %v606_v6 = vld [vmem:[%s659_s14 + $0x8] ss:$0 sps:$4 sm:$0xff]  }
  0x13   : > { %v217_v8 = vld [vmem:[%s659_s14 + $0x8] sm:$0xf] }
  0x14   : > { %285 = vrot.lane.b32.xlu1 %v298_v2, %s620_s16  ;;  %266 = vrot.lane.b32.xlu0 %v258_v4, %s621_s17  ;;  %v607_v9 = vld [vmem:[%s659_s14 + $0x8] ss:$0 sps:$4 sm:$0xff]  }
  0x15   : > { %v176_v10 = vld [vmem:[%s659_s14 + $0x8] sm:$0xf] }
  0x16   : > { %v608_v11 = vld [vmem:[%s659_s14 + $0x8] ss:$0 sps:$4 sm:$0xff]  }
  0x17   : > { %v609_v12 = vld [vmem:[%s659_s14 + $0x8] ss:$0 sps:$4 sm:$0xff]  }
  0x18   : > { %305 = vrot.lane.b32.xlu0 %v302_v3, %s619_s15  ;;  %264 = vrot.lane.b32.xlu1 %v302_v3, %s621_s17 }
  0x1c   : > { %287 = vrot.lane.b32.xlu0 %v606_v6, %s620_s16  ;;  %262 = vrot.lane.b32.xlu1 %v298_v2, %s621_s17 }
  0x20   : > { %283 = vrot.lane.b32.xlu0 %v281_v7, %s620_s16  ;;  %223 = vrot.lane.b32.xlu1 %v302_v3, %s622_s18 }
  0x24   : > { %225 = vrot.lane.b32.xlu0 %v217_v8, %s622_s18  ;;  %244 = vrot.lane.b32.xlu1 %v298_v2, %s623_s19 }
  0x28   : > { %246 = vrot.lane.b32.xlu0 %v607_v9, %s623_s19  ;;  %221 = vrot.lane.b32.xlu1 %v298_v2, %s622_s18 }
  0x2c   : > { %242 = vrot.lane.b32.xlu0 %v281_v7, %s623_s19  ;;  %182 = vrot.lane.b32.xlu1 %v302_v3, %s624_s20 }
  0x30   : > { %184 = vrot.lane.b32.xlu0 %v176_v10, %s624_s20  ;;  %203 = vrot.lane.b32.xlu1 %v298_v2, %s625_s21 }
  0x34   : > { %205 = vrot.lane.b32.xlu0 %v608_v11, %s625_s21  ;;  %180 = vrot.lane.b32.xlu1 %v298_v2, %s624_s20 }
  0x38   : > { %201 = vrot.lane.b32.xlu0 %v281_v7, %s625_s21  ;;  %161 = vrot.lane.b32.xlu1 %v298_v2, %s626_s22  ;;  %v318_v2 = vld [vmem:[%s705_s1] sm:$0xff] }
  0x3c   : > { %163 = vrot.lane.b32.xlu0 %v609_v12, %s626_s22  ;;  %159 = vrot.lane.b32.xlu1 %v281_v7, %s626_s22 }
  0x82   : > { %v308_v13 = vpop.permute.xlu0 %307  ;;  %v304_v14 = vpop.permute.xlu1 %303 }
  0x83   : > { %317 = vst.msk [vmem:[#allocation2 + $0x70] sm:$0xf] %vm151_vm0, %v308_v13 }
  0x86   : > { %v286_v15 = vpop.permute.xlu1 %285  ;;  %v267_v16 = vpop.permute.xlu0 %266 }
  0x87   : > { %276 = vst.msk [vmem:[#allocation2 + $0x58] sm:$0xf] %vm151_vm0, %v267_v16 }
  0x8a   : > { %v306_v17 = vpop.permute.xlu0 %305  ;;  %v265_v18 = vpop.permute.xlu1 %264  ;;  %v333_v19 = vld [vmem:[#allocation2 + $0x70] sm:$0xf] }
  0x8b   : > { %v310_v20 = vsel %vm309_vm2, %v304_v14, %v306_v17  ;;  %v311_v21 = vsel %vm309_vm2, %v306_v17, %v308_v13  ;;  %v270_v22 = vsel %vm268_vm3, %v265_v18, %v267_v16  ;;  %572 = vmatpush3.msk.msra.mxu1 %vm338_vm4, %v333_v19 }
  0x8c   : > { %315 = vst [vmem:[#allocation2 + $0x60] sm:$0xf] %v310_v20  ;;  %316 = vst [vmem:[#allocation2 + $0x68] sm:$0xf] %v311_v21  ;;  %573 = vmatprep.subr.mxu1 %v618_v0 }
  0x8d   : > { %275 = vst [vmem:[#allocation2 + $0x50] sm:$0xf] %v270_v22 }
  0x8e   : > { %v288_v23 = vpop.permute.xlu0 %287  ;;  %v263_v24 = vpop.permute.xlu1 %262 }
  0x8f   : > { %v291_v25 = vsel %vm289_vm6, %v286_v15, %v288_v23  ;;  %297 = vst.msk [vmem:[#allocation2 + $0x58] sm:$0xf0] %vm173_vm5, %v288_v23  ;;  %v269_v26 = vsel %vm268_vm3, %v263_v24, %v265_v18 }
  0x90   : > { %296 = vst [vmem:[#allocation2 + $0x50] sm:$0xf0] %v291_v25  ;;  %274 = vst [vmem:[#allocation2 + $0x48] sm:$0xf] %v269_v26 }
  0x92   : > { %v284_v27 = vpop.permute.xlu0 %283  ;;  %v224_v28 = vpop.permute.xlu1 %223 }
  0x93   : > { %v290_v29 = vsel %vm289_vm6, %v284_v27, %v286_v15  ;;  %v332_v30 = vld [vmem:[#allocation2 + $0x68] sm:$0xf]  ;;  %v331_v31 = vld [vmem:[#allocation2 + $0x60] sm:$0xf] }
  0x94   : > { %295 = vst [vmem:[#allocation2 + $0x48] sm:$0xf0] %v290_v29  ;;  %558 = vmatprep.subr.msk.mxu0 %vm338_vm4, %v332_v30 }
  0x95   : > { %559 = vmatpush1.msk.msra.mxu0 %vm338_vm4, %v331_v31 }
  0x96   : > { %v226_v32 = vpop.permute.xlu0 %225  ;;  %v245_v33 = vpop.permute.xlu1 %244  ;;  %v330_v34 = vld [vmem:[#allocation2 + $0x58] sm:$0xff] }
  0x97   : > { %v229_v35 = vsel %vm227_vm7, %v224_v28, %v226_v32  ;;  %235 = vst.msk [vmem:[#allocation2 + $0x40] sm:$0xf] %vm151_vm0, %v226_v32  ;;  %574 = vmatpush3.msra.mxu1 %v330_v34  ;;  %v329_v36 = vld [vmem:[#allocation2 + $0x50] sm:$0xff] }
  0x98   : > { %234 = vst [vmem:[#allocation2 + $0x38] sm:$0xf] %v229_v35  ;;  %372 = vmatprep.subr.mxu0 %v329_v36  ;;  %575 = vmatprep.subr.mxu1 %v618_v0 }
  0x9a   : > { %v247_v37 = vpop.permute.xlu0 %246  ;;  %v222_v38 = vpop.permute.xlu1 %221 }
  0x9b   : > { %v250_v39 = vsel %vm248_vm8, %v245_v33, %v247_v37  ;;  %256 = vst.msk [vmem:[#allocation2 + $0x40] sm:$0xf0] %vm173_vm5, %v247_v37  ;;  %v228_v40 = vsel %vm227_vm7, %v222_v38, %v224_v28  ;;  %v328_v41 = vld [vmem:[#allocation2 + $0x48] sm:$0xff] }
  0x9c   : > { %255 = vst [vmem:[#allocation2 + $0x38] sm:$0xf0] %v250_v39  ;;  %233 = vst [vmem:[#allocation2 + $0x30] sm:$0xf] %v228_v40  ;;  %373 = vmatpush1.msra.mxu0 %v328_v41 }
  0x9e   : > { %v243_v42 = vpop.permute.xlu0 %242  ;;  %v183_v43 = vpop.permute.xlu1 %182 }
  0x9f   : > { %v249_v44 = vsel %vm248_vm8, %v243_v42, %v245_v33 }
  0xa0   : > { %254 = vst [vmem:[#allocation2 + $0x30] sm:$0xf0] %v249_v44 }
  0xa2   : > { %v185_v45 = vpop.permute.xlu0 %184  ;;  %v204_v46 = vpop.permute.xlu1 %203  ;;  %v327_v47 = vld [vmem:[#allocation2 + $0x40] sm:$0xff] }
  0xa3   : > { %v188_v48 = vsel %vm186_vm9, %v183_v43, %v185_v45  ;;  %194 = vst.msk [vmem:[#allocation2 + $0x28] sm:$0xf] %vm151_vm0, %v185_v45  ;;  %576 = vmatpush3.msra.mxu1 %v327_v47  ;;  %v326_v49 = vld [vmem:[#allocation2 + $0x38] sm:$0xff] }
  0xa4   : > { %193 = vst [vmem:[#allocation2 + $0x20] sm:$0xf] %v188_v48  ;;  %374 = vmatprep.subr.mxu0 %v326_v49  ;;  %577 = vmatprep.subr.mxu1 %v618_v0 }
  0xa6   : > { %v206_v50 = vpop.permute.xlu0 %205  ;;  %v181_v51 = vpop.permute.xlu1 %180 }
  0xa7   : > { %v209_v52 = vsel %vm207_vm10, %v204_v46, %v206_v50  ;;  %215 = vst.msk [vmem:[#allocation2 + $0x28] sm:$0xf0] %vm173_vm5, %v206_v50  ;;  %v187_v53 = vsel %vm186_vm9, %v181_v51, %v183_v43  ;;  %v325_v54 = vld [vmem:[#allocation2 + $0x30] sm:$0xff] }
  0xa8   : > { %214 = vst [vmem:[#allocation2 + $0x20] sm:$0xf0] %v209_v52  ;;  %192 = vst [vmem:[#allocation2 + $0x18] sm:$0xf] %v187_v53  ;;  %375 = vmatpush1.msra.mxu0 %v325_v54 }
  0xaa   : > { %v202_v55 = vpop.permute.xlu0 %201  ;;  %v162_v56 = vpop.permute.xlu1 %161 }
  0xab   : > { %v208_v57 = vsel %vm207_vm10, %v202_v55, %v204_v46 }
  0xac   : > { %213 = vst [vmem:[#allocation2 + $0x18] sm:$0xf0] %v208_v57 }
  0xae   : > { %v164_v58 = vpop.permute.xlu0 %163  ;;  %v160_v59 = vpop.permute.xlu1 %159  ;;  %v324_v60 = vld [vmem:[#allocation2 + $0x28] sm:$0xff] }
  0xaf   : > { %v167_v61 = vsel %vm165_vm11, %v162_v56, %v164_v58  ;;  %174 = vst.msk [vmem:[#allocation2 + $0x10] sm:$0xf0] %vm173_vm5, %v164_v58  ;;  %v166_v62 = vsel %vm165_vm11, %v160_v59, %v162_v56  ;;  %578 = vmatpush3.msra.mxu1 %v324_v60  ;;  %v323_v63 = vld [vmem:[#allocation2 + $0x20] sm:$0xff] }
  0xb0   : > { %172 = vst [vmem:[#allocation2 + $0x8] sm:$0xf0] %v167_v61  ;;  %171 = vst [vmem:[#allocation2] sm:$0xf0] %v166_v62  ;;  %376 = vmatprep.subr.mxu0 %v323_v63  ;;  %579 = vmatprep.subr.mxu1 %v618_v0 }
  0xb3   : > { %v322_v1 = vld [vmem:[#allocation2 + $0x18] sm:$0xff] }
  0xb4   : > { %377 = vmatpush1.msra.mxu0 %v322_v1 }
  0xb6   : > { %v321_v3 = vld [vmem:[#allocation2 + $0x10] sm:$0xff] }
  0xb7   : > { %580 = vmatpush3.msra.mxu1 %v321_v3  ;;  %v320_v4 = vld [vmem:[#allocation2 + $0x8] sm:$0xff]  ;;  %v319_v5 = vld [vmem:[#allocation2] sm:$0xff] }
  0xb8   : > { %378 = vmatprep.subr.mxu0 %v320_v4  ;;  %582 = vmatmul.mubr.msk.f32.vlgmr.msra.gmra.mxu1 %vm334_vm12, %v318_v2 }
  0xb9   : > { %379 = vmatpush1.msra.mxu0 %v319_v5 }
  0xba   : > { %560 = vmatmul.mubr.msk.f32.vlgmr.msra.gmra.mxu0 %vm334_vm12, %v318_v2 }
 0x178   : > { %v485_v6 = vpop.f32.mrf.mxu1 }
 0x179   : > { %v491_v7 = vmax.f32 %v485_v6, 0.0 }
 0x17a   : > { %v414_v0 = vpop.f32.mrf.mxu0  ;;  %v583_v8 = vpop.f32.mrf.mxu1 }
 0x17b   : > { %v489_v9 = vmax.f32 %v414_v0, 0.0  ;;  %495 = vst.msk [vmem:[%s143_s28 + $0x10] sm:$0xff] %vm494_vm13, %v491_v7 }
 0x17c   : > { %v416_v10 = vpop.f32.mrf.mxu0 }
 0x17d   : > { %492 = vst [vmem:[%s143_s28] sm:$0xff] %v489_v9  ;;  %v490_v11 = vmax.f32 %v416_v10, 0.0 }
 0x17f   : > { %493 = vst [vmem:[%s143_s28 + $0x8] sm:$0xff] %v490_v11 }
 0x180 PF: > { %s12_s9 = sadd.s32 1, %s616_s9  }
 0x181   : > { %p9_p4 = scmp.ge.s32.totalorder %s12_s9, 4  }
 0x183   :  { %11 = sbr.rel (!%p9_p4) target bundleno = 1 (0x1), region = 58 }

</bundles_post_ra>
